<compile_context>
chip_gen: v6e
topology: v6e:2x2x1
jax: 0.10.0
libtpu: 0.0.40
codegen_flags: <defaults>
</compile_context>

<pallas_src>
import functools

import jax
import jax.numpy as jnp
from jax.experimental import pallas as pl
from jax.experimental.pallas import tpu as pltpu

_LANE = 128                 # feature dims padded to lane width
_MAX_TILE_M = 512           # output row tile upper bound
_MAX_TILE_K = 1024          # reduction tile for large graphs
_VMEM_LIMIT = 48 * 1024 * 1024       # scoped-VMEM cap; safe on v7x (64 MiB/TC)
_RESIDENT_BUDGET = 40 * 1024 * 1024  # est. buffer cap for the resident-XW path


def _round_up(x, m):
    return ((x + m - 1) // m) * m


def _pad_n(n):
    """Pad node count to a tile-friendly size without gross over-padding."""
    if n <= 128:
        return _round_up(n, 16)           # bf16 sublane packing needs mult of 16
    if n <= 2 * _MAX_TILE_K:
        return _round_up(n, _LANE)
    return _round_up(n, 512)


def _pick_tiles(n_pad):
    """(tile_m, tile_k) for the (n_pad, n_pad) normalized adjacency."""
    tile_m = n_pad
    for tm in (_MAX_TILE_M, 256, 128, 64, 32, 16):
        # >= 2 row tiles so the "parallel" axis can feed both v7x TensorCores.
        if n_pad % tm == 0 and n_pad // tm >= 2:
            tile_m = tm
            break
    if n_pad <= 2 * _MAX_TILE_K:
        tile_k = n_pad                    # full reduction in one step
    elif n_pad % _MAX_TILE_K == 0:
        tile_k = _MAX_TILE_K
    else:
        tile_k = 512                      # n_pad is a multiple of 512 here
    return tile_m, tile_k


# ------------------ kernel 1: feature transform  XW = X @ W ------------------
def _xw_kernel(x_ref, w_ref, o_ref):
    o_ref[...] = jnp.dot(
        x_ref[...], w_ref[...], preferred_element_type=jnp.float32
    ).astype(o_ref.dtype)


def _feature_transform(x_bf16, w_bf16, *, tile_m):
    """XW = X @ W (bf16 inputs, f32 MXU accumulation, bf16 output)."""
    n_pad, f_in_pad = x_bf16.shape
    f_out_pad = w_bf16.shape[1]
    return pl.pallas_call(
        _xw_kernel,
        out_shape=jax.ShapeDtypeStruct((n_pad, f_out_pad), jnp.bfloat16),
        grid=(n_pad // tile_m,),
        in_specs=[
            pl.BlockSpec((tile_m, f_in_pad), lambda i: (i, 0)),
            pl.BlockSpec((f_in_pad, f_out_pad), lambda i: (0, 0)),
        ],
        out_specs=pl.BlockSpec((tile_m, f_out_pad), lambda i: (i, 0)),
        compiler_params=pltpu.CompilerParams(
            dimension_semantics=("parallel",),
            vmem_limit_bytes=_VMEM_LIMIT),
    )(x_bf16, w_bf16)


# --------------- kernel 2: aggregation  A_hat @ XW + b (+ relu) ---------------
def _agg_resident_kernel(a_ref, xw_ref, b_ref, o_ref, acc_ref, *,
                         apply_relu, tile_k):
    """XW is VMEM-resident for the whole grid; slice the k-block in-kernel."""
    k = pl.program_id(1)

    @pl.when(k == 0)
    def _():
        acc_ref[...] = jnp.zeros_like(acc_ref)

    start = pl.multiple_of(k * tile_k, tile_k)
    xw_blk = xw_ref[pl.ds(start, tile_k), :]
    # bf16 x bf16 -> f32 accumulate on the MXU.
    acc_ref[...] += jnp.dot(a_ref[...], xw_blk,
                            preferred_element_type=jnp.float32)

    @pl.when(k == pl.num_programs(1) - 1)
    def _():
        h = acc_ref[...] + b_ref[...]       # bias/relu only in finalize branch
        if apply_relu:
            h = jnp.maximum(h, 0.0)
        o_ref[...] = h.astype(o_ref.dtype)


def _agg_streamed_kernel(a_ref, xw_ref, b_ref, o_ref, acc_ref, *, apply_relu):
    """Fallback: XW streamed per (i, k) tile (used when XW does not fit VMEM)."""
    k = pl.program_id(1)

    @pl.when(k == 0)
    def _():
        acc_ref[...] = jnp.zeros_like(acc_ref)

    acc_ref[...] += jnp.dot(a_ref[...], xw_ref[...],
                            preferred_element_type=jnp.float32)

    @pl.when(k == pl.num_programs(1) - 1)
    def _():
        h = acc_ref[...] + b_ref[...]
        if apply_relu:
            h = jnp.maximum(h, 0.0)
        o_ref[...] = h.astype(o_ref.dtype)


def _aggregate(a_bf16, xw_bf16, b_pad, *, apply_relu, out_dtype,
               tile_m, tile_k):
    n_pad = a_bf16.shape[0]
    f_out_pad = xw_bf16.shape[1]
    grid = (n_pad // tile_m, n_pad // tile_k)
    out_itemsize = jnp.dtype(out_dtype).itemsize

    # VMEM footprint estimate for the resident-XW layout (double/triple
    # buffers on pipelined streams; resident XW budgeted 2x to be safe).
    a_buf = 3 * tile_m * tile_k * 2
    xw_resident = 2 * n_pad * f_out_pad * 2
    out_buf = 2 * tile_m * f_out_pad * out_itemsize
    acc_buf = tile_m * f_out_pad * 4
    bias_buf = 2 * 8 * f_out_pad * 4
    resident_total = a_buf + xw_resident + out_buf + acc_buf + bias_buf
    use_resident = resident_total <= _RESIDENT_BUDGET

    flops = 2 * n_pad * n_pad * f_out_pad
    if use_resident:
        # Single pass over A_hat + one XW read + one output write.
        bytes_accessed = (n_pad * n_pad * 2
                          + n_pad * f_out_pad * 2
                          + n_pad * f_out_pad * out_itemsize)
        kernel = functools.partial(_agg_resident_kernel,
                                   apply_relu=apply_relu, tile_k=tile_k)
        xw_spec = pl.BlockSpec((n_pad, f_out_pad), lambda i, k: (0, 0))
    else:
        bytes_accessed = (n_pad * n_pad * 2
                          + grid[0] * n_pad * f_out_pad * 2
                          + n_pad * f_out_pad * out_itemsize)
        kernel = functools.partial(_agg_streamed_kernel, apply_relu=apply_relu)
        xw_spec = pl.BlockSpec((tile_k, f_out_pad), lambda i, k: (k, 0))

    # Deeper pipelining only pays off when there are enough grid steps.
    if grid[0] * grid[1] >= 3:
        a_spec = pl.BlockSpec((tile_m, tile_k), lambda i, k: (i, k),
                              pipeline_mode=pl.Buffered(3))
    else:
        a_spec = pl.BlockSpec((tile_m, tile_k), lambda i, k: (i, k))

    return pl.pallas_call(
        kernel,
        out_shape=jax.ShapeDtypeStruct((n_pad, f_out_pad), out_dtype),
        grid=grid,
        in_specs=[
            a_spec,                               # dominant HBM stream
            xw_spec,
            pl.BlockSpec((1, f_out_pad), lambda i, k: (0, 0)),
        ],
        out_specs=pl.BlockSpec((tile_m, f_out_pad), lambda i, k: (i, 0)),
        # f32 accumulator scratch is kept on purpose: non-final layers emit
        # bf16, so accumulating directly into o_ref would lose precision.
        scratch_shapes=[pltpu.VMEM((tile_m, f_out_pad), jnp.float32)],
        compiler_params=pltpu.CompilerParams(
            dimension_semantics=("parallel", "arbitrary"),
            vmem_limit_bytes=_VMEM_LIMIT),
        cost_estimate=pl.CostEstimate(
            flops=flops, transcendentals=0, bytes_accessed=bytes_accessed),
    )(a_bf16, xw_bf16, b_pad)


# ----------------------------- layer / forward --------------------------------
def gcn_layer(a_bf16_pad, h_bf16_pad, w, b, *, apply_relu, tile_m, tile_k):
    """One GCNConv layer on padded operands: relu?(A_hat @ (h @ W) + b)."""
    f_in, f_out = w.shape
    f_in_pad = h_bf16_pad.shape[1]
    f_out_pad = _round_up(f_out, _LANE)

    w_pad = jnp.zeros((f_in_pad, f_out_pad), jnp.float32)
    w_pad = w_pad.at[:f_in, :f_out].set(w)
    w_bf16 = w_pad.astype(jnp.bfloat16)
    b_pad = jnp.zeros((1, f_out_pad), jnp.float32).at[0, :f_out].set(b)

    xw = _feature_transform(h_bf16_pad, w_bf16, tile_m=tile_m)   # bf16
    out_dtype = jnp.bfloat16 if apply_relu else jnp.float32      # f32 last layer
    return _aggregate(a_bf16_pad, xw, b_pad, apply_relu=apply_relu,
                      out_dtype=out_dtype, tile_m=tile_m, tile_k=tile_k)


def gnn_forward(a_hat, x, params):
    """Full GNN forward: list of (W, b) layers, relu on all but the last."""
    n, f_in = x.shape
    n_pad = _pad_n(n)
    tile_m, tile_k = _pick_tiles(n_pad)
    f_in_pad = _round_up(f_in, _LANE)

    # Pad + cast the adjacency once; it is reused (streamed) by every layer.
    a_pad = jnp.zeros((n_pad, n_pad), jnp.bfloat16)
    a_pad = a_pad.at[:n, :n].set(a_hat.astype(jnp.bfloat16))

    # bf16 activations throughout (only the final layer emits f32).
    h = jnp.zeros((n_pad, f_in_pad), jnp.bfloat16)
    h = h.at[:n, :f_in].set(x.astype(jnp.bfloat16))

    n_layers = len(params)
    for i, (w, b) in enumerate(params):
        h = gcn_layer(a_pad, h, w, b, apply_relu=(i != n_layers - 1),
                      tile_m=tile_m, tile_k=tile_k)

    f_out_last = params[-1][0].shape[1]
    return h[:n, :f_out_last]


# ------------------------------- graph glue -----------------------------------
def build_normalized_adjacency(edge_index, num_nodes):
    """Dense A_hat = D^{-1/2}(A + I)D^{-1/2} from a (2, E) edge index."""
    src, dst = edge_index[0], edge_index[1]
    adj = jnp.zeros((num_nodes, num_nodes), jnp.float32)
    adj = adj.at[src, dst].set(1.0)
    adj = adj.at[dst, src].set(1.0)                               # undirected
    adj = jnp.maximum(adj, jnp.eye(num_nodes, dtype=jnp.float32))  # self loops
    deg = jnp.sum(adj, axis=1)
    d_inv_sqrt = jnp.where(deg > 0, 1.0 / jnp.sqrt(deg), 0.0)
    return d_inv_sqrt[:, None] * adj * d_inv_sqrt[None, :]


def init_gnn_params(key, node_feature_size, output_embedding_size,
                    num_layers, hidden_dim):
    """Deterministic glorot-ish init matching the module's layer_sizes."""
    layer_sizes = ([node_feature_size] + [hidden_dim] * num_layers +
                   [output_embedding_size])
    params = []
    for i in range(len(layer_sizes) - 1):
        key, wk = jax.random.split(key)
        fan_in, fan_out = layer_sizes[i], layer_sizes[i + 1]
        scale = jnp.sqrt(6.0 / (fan_in + fan_out))
        w = jax.random.uniform(wk, (fan_in, fan_out), jnp.float32,
                               minval=-scale, maxval=scale)
        b = jnp.zeros((fan_out,), jnp.float32)
        params.append((w, b))
    return params


def gnn_reference(a_hat, x, params):
    """Pure-JAX f32 reference for tolerance checking."""
    h = x
    n_layers = len(params)
    for i, (w, b) in enumerate(params):
        h = a_hat @ (h @ w) + b
        if i != n_layers - 1:
            h = jax.nn.relu(h)
    return h


if __name__ == "__main__":
    # Small synthetic graph / model config.
    num_nodes = 16
    node_feature_size = 8
    hidden_dim = 32
    output_embedding_size = 16
    num_layers = 2
    num_edges = 24

    key = jax.random.PRNGKey(0)
    kx, ke, kp = jax.random.split(key, 3)

    x = jax.random.normal(kx, (num_nodes, node_feature_size), jnp.float32)
    edge_index = jax.random.randint(ke, (2, num_edges), 0, num_nodes,
                                    dtype=jnp.int32)

    a_hat = build_normalized_adjacency(edge_index, num_nodes)
    params = init_gnn_params(kp, node_feature_size, output_embedding_size,
                             num_layers, hidden_dim)

    out = gnn_forward(a_hat, x, params)
    out = jax.block_until_ready(out)

    assert out.shape == (num_nodes, output_embedding_size)
    assert out.dtype == jnp.float32
    assert bool(jnp.all(jnp.isfinite(out)))

    # bf16-tolerance correctness check against the pure-JAX f32 reference.
    ref = gnn_reference(a_hat, x, params)
    err = float(jnp.max(jnp.abs(out - ref)))
    scale = float(jnp.max(jnp.abs(ref))) + 1.0
    assert err <= 5e-2 * scale, (err, scale)

    print("KERNEL_OK")
</pallas_src>

<mosaic_0001>
module attributes {stable_mosaic.version = 11 : i64} {
  func.func @_xw_kernel(%arg0: i32, %arg1: memref<16x128xbf16, #tpu.memory_space<vmem>>, %arg2: memref<128x128xbf16, #tpu.memory_space<vmem>>, %arg3: memref<16x128xbf16, #tpu.memory_space<vmem>>) attributes {dimension_semantics = [#tpu.dimension_semantics<parallel>], iteration_bounds = array<i64: 1>, scalar_prefetch = 0 : i64, scratch_operands = 0 : i64, tpu.core_type = #tpu.core_type<tc>, window_params = [{transform_indices = @transform_0, window_bounds = array<i64: 16, 128>}, {pipeline_mode = #tpu.pipeline_mode<synchronous>, transform_indices = @transform_1, window_bounds = array<i64: 128, 128>}, {transform_indices = @transform_2, window_bounds = array<i64: 16, 128>}]} {
    %c0 = arith.constant 0 : index
    %c0_0 = arith.constant 0 : index
    %0 = vector.load %arg1[%c0, %c0_0] : memref<16x128xbf16, #tpu.memory_space<vmem>>, vector<16x128xbf16>
    %c0_1 = arith.constant 0 : index
    %c0_2 = arith.constant 0 : index
    %1 = vector.load %arg2[%c0_1, %c0_2] : memref<128x128xbf16, #tpu.memory_space<vmem>>, vector<128x128xbf16>
    %cst = arith.constant dense<0.000000e+00> : vector<16x128xf32>
    %2 = tpu.matmul %0, %1, %cst {dimension_numbers = #tpu.dot_dimension_numbers<[1], [0], [0], [1], [0, 0, 1, 1], [], []>} : vector<16x128xbf16>, vector<128x128xbf16>, vector<16x128xf32> -> vector<16x128xf32>
    %3 = arith.truncf %2 : vector<16x128xf32> to vector<16x128xbf16>
    %c0_3 = arith.constant 0 : index
    %c0_4 = arith.constant 0 : index
    %4 = vector.load %arg3[%c0_3, %c0_4] : memref<16x128xbf16, #tpu.memory_space<vmem>>, vector<16x128xbf16>
    tpu.vector_store %arg3[%c0_3, %c0_4], %3 {strides = array<i32>} : memref<16x128xbf16, #tpu.memory_space<vmem>>, vector<16x128xbf16>,
    return
  }
  func.func @transform_0(%arg0: i32) -> (i32, i32) {
    %c0_i32 = arith.constant 0 : i32
    %c0_i32_0 = arith.constant 0 : i32
    return %arg0, %c0_i32 : i32, i32
  }
  func.func @transform_1(%arg0: i32) -> (i32, i32) {
    %c0_i32 = arith.constant 0 : i32
    %c0_i32_0 = arith.constant 0 : i32
    %c0_i32_1 = arith.constant 0 : i32
    return %c0_i32, %c0_i32_0 : i32, i32
  }
  func.func @transform_2(%arg0: i32) -> (i32, i32) {
    %c0_i32 = arith.constant 0 : i32
    %c0_i32_0 = arith.constant 0 : i32
    return %arg0, %c0_i32 : i32, i32
  }
}

</mosaic_0001>

<bundles_post_ra>
// kernel: tpu_custom_call.1
= control target key start
LH: loop header
LB: loop body
LE: loop exit
PB: predicated region body
PF: predicated region fallthrough
CT: control target
= control target key end

     0   :  { %7 = vsyncpa [#allocation3], 0  ;;  %s351_s0 = inlined_call_operand.hbm [shape: bf16[16,128], index: 0, kind: input, shape index: {}]   ;;  %s352_s1 = inlined_call_operand.hbm [shape: bf16[128,128], index: 1, kind: input, shape index: {}]   ;;  %s353_s2 = inlined_call_operand.hbm [shape: bf16[16,128], index: 2, kind: output, shape index: {}]  }
   0x1   :  { %8 = vsyncpa [#allocation6], 0 }
   0x2   :  { %9 = vsyncpa [#allocation4], 0  ;;  %s311_s9 = smov [#allocation2]  }
   0x3   :  { %s15_s10 = sshll.u32 %s311_s9, 4  ;;  %s16_s10 = int_to_ptr.vmem [resolvable:$true] %s15_s10 }
   0x4   :  { %s253_s11 = scalar_lea.vmem %s16_s10, 128  ;;  %p258_p1 = scmp.lt.s32.totalorder %s16_s10, %s16_s10 }
   0x5   :  { %p254_p0 = scmp.ne.s32.totalorder %s16_s10, %s253_s11  ;;  %p259_p2 = scmp.lt.s32.totalorder %s253_s11, %s253_s11 }
   0x7   :  { %p260_p3 = por %p259_p2, %p258_p1 }
   0x9   :  { %p261_p4 = pnand %p260_p3, %p254_p0 }
   0xb   :  { %264 = shalt.err (!%p261_p4)
}
   0xc   :  { %s312_s12 = smov 64   ;;  %s313_s13 = smov 4  }
   0xd   :  { %21 = dma.hbm_to_vmem [thread:$0]  %s351_s0, 128, %s16_s10, [#allocation3], %s312_s12, %s312_s12, %s313_s13  }
   0xe   :  { %s314_s16 = smov [#allocation5]  }
   0xf   :  { %s27_s17 = sshll.u32 %s314_s16, 4  ;;  %s28_s17 = int_to_ptr.vmem [resolvable:$true] %s27_s17 }
  0x10   :  { %s273_s18 = scalar_lea.vmem %s28_s17, 1024  ;;  %p278_p6 = scmp.lt.s32.totalorder %s28_s17, %s28_s17 }
  0x11   :  { %p274_p5 = scmp.ne.s32.totalorder %s28_s17, %s273_s18  ;;  %p279_p7 = scmp.lt.s32.totalorder %s273_s18, %s273_s18 }
  0x13   :  { %p280_p8 = por %p279_p7, %p278_p6 }
  0x15   :  { %p281_p9 = pnand %p280_p8, %p274_p5 }
  0x17   :  { %284 = shalt.err (!%p281_p9)
}
  0x18   :  { %33 = dma.hbm_to_vmem [thread:$0]  %s352_s1, 1024, %s28_s17, [#allocation6], %s312_s12, %s312_s12, %s313_s13  }
  0x19   :  { %305 = dma.done.wait [#allocation3], 128  }
  0x1a   :  { %306 = vsyncadd [#allocation3], 4294967168 }
  0x1b   :  { %307 = dma.done.wait [#allocation6], 1024  }
  0x1c   :  { %308 = vsyncadd [#allocation6], 4294966272  ;;  %v315_v0 = vmov 0.0   ;;  %vm316_vm0 = vmmov 0   ;;  %v236_v1 = vld [vmem:[#allocation5 + $0x38] sm:$0xff]   ;;  %v237_v2 = vld [vmem:[#allocation5 + $0x30] sm:$0xff]  }
  0x1d   :  { %209 = vmatprep.subr.bf16.mxu0 %v315_v0  ;;  %225 = vmatprep.mubr.msk.bf16.mxu0 %vm316_vm0, %v315_v0  ;;  %v238_v3 = vld [vmem:[#allocation5 + $0x28] sm:$0xff]   ;;  %v239_v4 = vld [vmem:[#allocation5 + $0x20] sm:$0xff]   ;;  %v240_v5 = vld [vmem:[#allocation5 + $0x18] sm:$0xff]   ;;  %s317_s0 = smov [#allocation7]  }
  0x1e   :  { %210 = vmatpush3.bf16.msra.mxu0 %v236_v1  ;;  %v241_v6 = vld [vmem:[#allocation5 + $0x10] sm:$0xff]   ;;  %v242_v7 = vld [vmem:[#allocation5 + $0x8] sm:$0xff]   ;;  %v243_v8 = vld [vmem:[#allocation5] sm:$0xff]   ;;  %s169_s1 = sshll.u32 %s317_s0, 4  ;;  %s170_s1 = int_to_ptr.vmem [resolvable:$true] %s169_s1 }
  0x1f   :  { %211 = vmatprep.subr.bf16.mxu0 %v315_v0  ;;  %v244_v9 = vld [vmem:[#allocation2] sm:$0xff]   ;;  %s285_s21 = scalar_lea.vmem %s170_s1, 128  ;;  %p290_p11 = scmp.lt.s32.totalorder %s170_s1, %s170_s1 }
  0x20   :  { %p286_p10 = scmp.ne.s32.totalorder %s170_s1, %s285_s21  ;;  %p291_p12 = scmp.lt.s32.totalorder %s285_s21, %s285_s21 }
  0x22   :  { %212 = vmatpush3.bf16.msra.mxu0 %v237_v2  ;;  %p292_p13 = por %p291_p12, %p290_p11 }
  0x23   :  { %213 = vmatprep.subr.bf16.mxu0 %v315_v0 }
  0x24   :  { %p293_p0 = pnand %p292_p13, %p286_p10 }
  0x26   :  { %214 = vmatpush3.bf16.msra.mxu0 %v238_v3 }
  0x27   :  { %215 = vmatprep.subr.bf16.mxu0 %v315_v0 }
  0x2a   :  { %216 = vmatpush3.bf16.msra.mxu0 %v239_v4 }
  0x2b   :  { %217 = vmatprep.subr.bf16.mxu0 %v315_v0 }
  0x2e   :  { %218 = vmatpush3.bf16.msra.mxu0 %v240_v5 }
  0x2f   :  { %219 = vmatprep.subr.bf16.mxu0 %v315_v0 }
  0x32   :  { %220 = vmatpush3.bf16.msra.mxu0 %v241_v6 }
  0x33   :  { %221 = vmatprep.subr.bf16.mxu0 %v315_v0 }
  0x36   :  { %222 = vmatpush3.bf16.msra.mxu0 %v242_v7 }
  0x37   :  { %223 = vmatprep.subr.bf16.mxu0 %v315_v0 }
  0x3a   :  { %224 = vmatpush3.bf16.msra.mxu0 %v243_v8 }
  0x3d   :  { %226 = vmatmul.mubr.bf16.vlgmr.msra.gmra.mxu0 %v244_v9 }
  0xfd   :  { %v147_v10 = vpop.f32.mrf.mxu0 }
  0xff   :  { %v227_v11 = vpop.f32.mrf.mxu0 }
 0x101   :  { %v150_v12 = vpop.f32.mrf.mxu0 }
 0x102   :  { %v198_v13 = vpack.c.bf16 %v150_v12, %v147_v10 }
 0x103   :  { %v228_v14 = vpop.f32.mrf.mxu0 }
 0x104   :  { %199 = vst [vmem:[#allocation7] sm:$0xff] %v198_v13  }
 0x105   :  { %296 = shalt.err (!%p293_p0)
}
 0x106   :  { %175 = dma.vmem_to_hbm [thread:$0]  %s170_s1, 128, %s353_s2, [#allocation4], %s312_s12, %s312_s12, %s313_s13  }
 0x107   :  { %309 = dma.done.wait [#allocation4], 128  }
 0x108   :  { %310 = vsyncadd [#allocation4], 4294967168 }
 0x109   :  { %179 = vsyncpa [#allocation3], 1 }
 0x10a   :  { %180 = vsyncpa [#allocation6], 1 }
 0x10b   :  { %181 = vsyncpa [#allocation4], 1 }

</bundles_post_ra>
